<compile_context>
chip_gen: v7x
topology: tpu7x:2x2x1
jax: 0.10.0
libtpu: 0.0.40
codegen_flags: <defaults>
</compile_context>

<pallas_src>
import functools

import jax
import jax.numpy as jnp
from jax.experimental import pallas as pl
from jax.experimental.pallas import tpu as pltpu


# ----------------------------------------------------------------------------
# Pallas kernel: per-row LayerNorm with torch.std() (unbiased, /(D-1)) semantics
# ----------------------------------------------------------------------------
def _row_layernorm_kernel(x_ref, gamma_ref, beta_ref, o_ref, *, eps, affine):
    # x_ref: (row_tile, D) VMEM; gamma/beta: (1, D) VMEM resident; o_ref: (row_tile, D)
    x = x_ref[...].astype(jnp.float32)
    d = x.shape[-1]                          # NOTE: requires D >= 2 (unbiased /(D-1))
    inv_d = jnp.float32(1.0 / d)
    inv_dm1 = jnp.float32(1.0 / (d - 1))

    # Fused single-pass statistics: two cross-lane reductions per row.
    row_sum = jnp.sum(x, axis=-1, keepdims=True)
    row_sumsq = jnp.sum(x * x, axis=-1, keepdims=True)
    mean = row_sum * inv_d
    var = jnp.maximum((row_sumsq - row_sum * mean) * inv_dm1, 0.0)
    std = jnp.sqrt(var)

    inv = pl.reciprocal(std + jnp.float32(eps), approx=False)
    y = (x - mean) * inv
    if affine:
        g = gamma_ref[...].astype(jnp.float32)   # hoisted: one broadcast per tile
        b = beta_ref[...].astype(jnp.float32)
        y = y * g + b
    o_ref[...] = y.astype(o_ref.dtype)           # full, unmasked lane-dense store


def _round_up(n, m):
    return ((n + m - 1) // m) * m


def _choose_row_tile(num_rows, d, itemsize):
    # ~2 MiB per (in, out) tile -> double-buffered usage well under the scoped
    # VMEM default on every generation (incl. v7x's smaller 64 MiB physical).
    budget = 2 * 1024 * 1024
    rows = budget // max(1, d * itemsize)
    rows = max(8, min(1024, (rows // 8) * 8))
    rows = min(rows, _round_up(num_rows, 8))
    # Prefer >= 2 grid steps so v7x's two TensorCores both get work.
    if _round_up(num_rows, rows) // rows < 2 and num_rows > 8:
        rows = max(8, _round_up(_round_up(num_rows, 8) // 2, 8))
    return rows


def grouped_layer_norm(x, gamma, beta, *, num_users, eps=1e-5, affine=True):
    """GroupedLayerNorm.forward: x (B, L_total, D) -> (B, num_users*L + 1, D).

    Tokens in [num_users*L, L_total-1) are dropped and the last token (class
    token) passes through unchanged — exactly matching the PyTorch module.
    """
    B, L_total, D = x.shape
    assert D == gamma.shape[-1], "Embedding dimension mismatch"
    L = (L_total - 1) // num_users
    nl = num_users * L

    # Flatten the tokens that actually get normalized into a dense (rows, D) slab.
    body = x[:, :nl, :].reshape(B * nl, D)
    R = B * nl
    row_tile = _choose_row_tile(R, D, jnp.dtype(x.dtype).itemsize)
    R_pad = _round_up(R, row_tile)
    if R_pad != R:
        body = jnp.concatenate(
            [body, jnp.zeros((R_pad - R, D), body.dtype)], axis=0)

    gamma2 = gamma.reshape(1, D).astype(jnp.float32)
    beta2 = beta.reshape(1, D).astype(jnp.float32)

    kernel = functools.partial(_row_layernorm_kernel, eps=float(eps), affine=affine)

    normed = pl.pallas_call(
        kernel,
        out_shape=jax.ShapeDtypeStruct((R_pad, D), x.dtype),
        grid_spec=pltpu.PrefetchScalarGridSpec(
            num_scalar_prefetch=0,
            grid=(R_pad // row_tile,),
            in_specs=[
                pl.BlockSpec((row_tile, D), lambda i: (i, 0)),
                pl.BlockSpec((1, D), lambda i: (0, 0)),   # gamma stays resident
                pl.BlockSpec((1, D), lambda i: (0, 0)),   # beta stays resident
            ],
            out_specs=pl.BlockSpec((row_tile, D), lambda i: (i, 0)),
        ),
        compiler_params=pltpu.CompilerParams(
            dimension_semantics=("parallel",),
        ),
    )(body, gamma2, beta2)

    normed = normed[:R].reshape(B, nl, D)
    # Class-token passthrough handled outside the kernel (no ragged masked store).
    return jnp.concatenate([normed, x[:, -1:, :]], axis=1)


def grouped_layer_norm_ref(x, gamma, beta, *, num_users, eps=1e-5, affine=True):
    """Pure-JAX reference mirroring the PyTorch GroupedLayerNorm forward exactly."""
    B, L_total, D = x.shape
    L = (L_total - 1) // num_users
    groups = [x[:, i * L:(i + 1) * L, :] for i in range(num_users)]
    class_token = x[:, -1:, :]
    normed = []
    for g in groups:
        mean = jnp.mean(g, axis=-1, keepdims=True)
        std = jnp.sqrt(jnp.sum((g - mean) ** 2, axis=-1, keepdims=True) / (D - 1))
        n = (g - mean) / (std + eps)
        if affine:
            n = n * gamma + beta
        normed.append(n)
    return jnp.concatenate(normed + [class_token], axis=1)


# ----------------------------------------------------------------------------
# Small pure-JAX VisionTransformer forward using the Pallas GroupedLayerNorm.
# Dense matmuls (patch projection, attention, MLP, head) are left to XLA.
# ----------------------------------------------------------------------------
def _linear_params(key, out_dim, in_dim, scale=0.02):
    kw, kb = jax.random.split(key)
    return {"w": scale * jax.random.normal(kw, (out_dim, in_dim), jnp.float32),
            "b": scale * jax.random.normal(kb, (out_dim,), jnp.float32)}


def _linear(x, p):
    return x @ p["w"].T + p["b"]


def _block_params(key, embed_dim, num_heads, hidden_dim):
    ks = jax.random.split(key, 8)
    return {
        "ln1_gamma": jnp.ones((embed_dim,), jnp.float32)
                     + 0.01 * jax.random.normal(ks[0], (embed_dim,)),
        "ln1_beta": 0.01 * jax.random.normal(ks[1], (embed_dim,)),
        "ln2_gamma": jnp.ones((embed_dim,), jnp.float32)
                     + 0.01 * jax.random.normal(ks[2], (embed_dim,)),
        "ln2_beta": 0.01 * jax.random.normal(ks[3], (embed_dim,)),
        "attn_in": _linear_params(ks[4], 3 * embed_dim, embed_dim),
        "attn_out": _linear_params(ks[5], embed_dim, embed_dim),
        "fc1": _linear_params(ks[6], hidden_dim, embed_dim),
        "fc2": _linear_params(ks[7], embed_dim, hidden_dim),
    }


def init_vit_params(key, *, image_size, patch_size, num_classes, embed_dim,
                    depth, num_heads, hidden_dim, in_channels=1):
    num_patches = (image_size // patch_size) ** 2
    keys = jax.random.split(key, 5 + depth)
    return {
        "proj": _linear_params(keys[0], embed_dim, in_channels * patch_size ** 2),
        "cls_token": 0.02 * jax.random.normal(keys[1], (1, 1, embed_dim), jnp.float32),
        "pos_emb": 0.02 * jax.random.normal(keys[2], (1, num_patches, embed_dim), jnp.float32),
        "cls_pos_emb": 0.02 * jax.random.normal(keys[3], (1, 1, embed_dim), jnp.float32),
        "head": _linear_params(keys[4], num_classes, embed_dim),
        "blocks": [_block_params(keys[5 + i], embed_dim, num_heads, hidden_dim)
                   for i in range(depth)],
    }


def _image_to_patch_sequence(x, patch_size):
    B, C, H, W = x.shape
    p = patch_size
    x = x.reshape(B, C, H // p, p, W // p, p)
    x = x.transpose(0, 2, 4, 1, 3, 5)
    return x.reshape(B, (H // p) * (W // p), C * p * p)


def _multihead_attention(x, in_p, out_p, num_heads):
    B, L, D = x.shape
    qkv = _linear(x, in_p)
    q, k, v = jnp.split(qkv, 3, axis=-1)
    dh = D // num_heads

    def split_heads(t):
        return t.reshape(B, L, num_heads, dh).transpose(0, 2, 1, 3)

    q, k, v = split_heads(q), split_heads(k), split_heads(v)
    scores = jnp.einsum("bhqd,bhkd->bhqk", q, k) / jnp.sqrt(jnp.float32(dh))
    attn = jax.nn.softmax(scores, axis=-1)
    out = jnp.einsum("bhqk,bhkd->bhqd", attn, v)
    out = out.transpose(0, 2, 1, 3).reshape(B, L, D)
    return _linear(out, out_p)


def _encoder_block(x, p, num_heads, layernorm_fn):
    # TransformerEncoderBlock.forward (mode='concat'); GroupedLayerNorm has num_users=2.
    h = layernorm_fn(x, p["ln1_gamma"], p["ln1_beta"])
    x = x + _multihead_attention(h, p["attn_in"], p["attn_out"], num_heads)
    h = layernorm_fn(x, p["ln2_gamma"], p["ln2_beta"])
    m = jax.nn.gelu(_linear(h, p["fc1"]), approximate=False)
    m = jax.nn.gelu(_linear(m, p["fc2"]), approximate=False)
    # TODO(synk): dropout layers are treated as inference-mode identity (no RNG masking).
    return x + m


def vit_forward(x, params, *, patch_size, num_users, num_heads, layernorm_fn):
    x = x.reshape(num_users, -1, x.shape[1], x.shape[2], x.shape[3])
    N, B = x.shape[0], x.shape[1]
    emb = jnp.stack([_linear(_image_to_patch_sequence(x[u], patch_size), params["proj"])
                     for u in range(N)])                        # (N, B, P, D)
    D = emb.shape[-1]
    emb = emb.transpose(1, 0, 2, 3).reshape(B, -1, D)           # (B, N*P, D)
    cls = jnp.broadcast_to(params["cls_token"], (B, 1, D))
    seq = jnp.concatenate([emb, cls], axis=1)                   # (B, N*P+1, D)
    # Learned positional encoding (PositionalEncoding.forward).
    L_total = seq.shape[1]
    L = (L_total - 1) // num_users
    groups = [seq[:, i * L:(i + 1) * L, :] + params["pos_emb"] for i in range(num_users)]
    cls_tok = seq[:, -1:, :] + params["cls_pos_emb"]
    seq = jnp.concatenate(groups + [cls_tok], axis=1)
    # Mirrors the torch loop exactly: every block reads `seq` (not chained).
    z = seq
    for blk in params["blocks"]:
        z = _encoder_block(seq, blk, num_heads, layernorm_fn)
    return _linear(z[:, -1], params["head"])


if __name__ == "__main__":
    key = jax.random.PRNGKey(0)
    k_ln, k_vit, k_img = jax.random.split(key, 3)

    # --- standalone GroupedLayerNorm check (includes a dropped leftover token) ---
    D = 128
    kx, kg, kb = jax.random.split(k_ln, 3)
    x_ln = jax.random.normal(kx, (2, 18, D), jnp.float32)   # L=8 per user, 1 dropped, 1 cls
    gamma = jnp.ones((D,), jnp.float32) + 0.01 * jax.random.normal(kg, (D,))
    beta = 0.01 * jax.random.normal(kb, (D,))
    out_ln = jax.block_until_ready(
        grouped_layer_norm(x_ln, gamma, beta, num_users=2))
    ref_ln = grouped_layer_norm_ref(x_ln, gamma, beta, num_users=2)
    assert out_ln.shape == ref_ln.shape, (out_ln.shape, ref_ln.shape)
    err_ln = float(jnp.max(jnp.abs(out_ln - ref_ln)))
    assert err_ln < 5e-5, err_ln

    # --- small VisionTransformer forward using the Pallas GroupedLayerNorm ---
    image_size, patch_size, embed_dim = 16, 4, 128
    depth, num_heads, hidden_dim, num_classes, num_users = 2, 4, 64, 10, 2
    B = 2
    params = init_vit_params(k_vit, image_size=image_size, patch_size=patch_size,
                             num_classes=num_classes, embed_dim=embed_dim,
                             depth=depth, num_heads=num_heads,
                             hidden_dim=hidden_dim, in_channels=1)
    images = jax.random.normal(
        k_img, (num_users * B, 1, image_size, image_size), jnp.float32)

    ln_pallas = functools.partial(grouped_layer_norm, num_users=2)
    ln_ref = functools.partial(grouped_layer_norm_ref, num_users=2)

    logits = jax.block_until_ready(
        vit_forward(images, params, patch_size=patch_size, num_users=num_users,
                    num_heads=num_heads, layernorm_fn=ln_pallas))
    logits_ref = vit_forward(images, params, patch_size=patch_size,
                             num_users=num_users, num_heads=num_heads,
                             layernorm_fn=ln_ref)
    assert logits.shape == (B, num_classes), logits.shape
    err_vit = float(jnp.max(jnp.abs(logits - logits_ref)))
    assert err_vit < 2e-4, err_vit

    print("KERNEL_OK")
</pallas_src>

<mosaic_0001>
module attributes {stable_mosaic.version = 11 : i64} {
  func.func @_row_layernorm_kernel(%arg0: i32, %arg1: memref<16x128xf32, #tpu.memory_space<vmem>>, %arg2: memref<1x128xf32, #tpu.memory_space<vmem>>, %arg3: memref<1x128xf32, #tpu.memory_space<vmem>>, %arg4: memref<16x128xf32, #tpu.memory_space<vmem>>) attributes {dimension_semantics = [#tpu.dimension_semantics<parallel>], iteration_bounds = array<i64: 2>, scalar_prefetch = 0 : i64, scratch_operands = 0 : i64, tpu.core_type = #tpu.core_type<tc>, window_params = [{transform_indices = @transform_0, window_bounds = array<i64: 16, 128>}, {pipeline_mode = #tpu.pipeline_mode<synchronous>, transform_indices = @transform_1, window_bounds = array<i64: 1, 128>}, {pipeline_mode = #tpu.pipeline_mode<synchronous>, transform_indices = @transform_2, window_bounds = array<i64: 1, 128>}, {transform_indices = @transform_3, window_bounds = array<i64: 16, 128>}]} {
    %c0 = arith.constant 0 : index
    %c0_0 = arith.constant 0 : index
    %0 = vector.load %arg1[%c0, %c0_0] : memref<16x128xf32, #tpu.memory_space<vmem>>, vector<16x128xf32>
    %cst = arith.constant dense<0.000000e+00> : vector<16xf32>
    %1 = vector.multi_reduction <add>, %0, %cst [1] : vector<16x128xf32> to vector<16xf32>
    %2 = vector.shape_cast %1 : vector<16xf32> to vector<16x1xf32>
    %3 = arith.mulf %0, %0 : vector<16x128xf32>
    %cst_1 = arith.constant dense<0.000000e+00> : vector<16xf32>
    %4 = vector.multi_reduction <add>, %3, %cst_1 [1] : vector<16x128xf32> to vector<16xf32>
    %5 = vector.shape_cast %4 : vector<16xf32> to vector<16x1xf32>
    %cst_2 = arith.constant 7.812500e-03 : f32
    %6 = vector.broadcast %cst_2 : f32 to vector<16x1xf32>
    %7 = arith.mulf %2, %6 : vector<16x1xf32>
    %8 = arith.mulf %2, %7 : vector<16x1xf32>
    %9 = arith.subf %5, %8 : vector<16x1xf32>
    %cst_3 = arith.constant 0.00787401571 : f32
    %10 = vector.broadcast %cst_3 : f32 to vector<16x1xf32>
    %11 = arith.mulf %9, %10 : vector<16x1xf32>
    %cst_4 = arith.constant 0.000000e+00 : f32
    %12 = vector.broadcast %cst_4 : f32 to vector<16x1xf32>
    %13 = arith.maximumf %11, %12 : vector<16x1xf32>
    %14 = math.sqrt %13 : vector<16x1xf32>
    %cst_5 = arith.constant 9.99999974E-6 : f32
    %15 = vector.broadcast %cst_5 : f32 to vector<16x1xf32>
    %16 = arith.addf %14, %15 : vector<16x1xf32>
    %17 = tpu.reciprocal %16 : vector<16x1xf32> -> vector<16x1xf32>
    %18 = vector.broadcast %7 : vector<16x1xf32> to vector<16x128xf32>
    %19 = arith.subf %0, %18 : vector<16x128xf32>
    %20 = vector.broadcast %17 : vector<16x1xf32> to vector<16x128xf32>
    %21 = arith.mulf %19, %20 : vector<16x128xf32>
    %c0_6 = arith.constant 0 : index
    %c0_7 = arith.constant 0 : index
    %22 = vector.load %arg2[%c0_6, %c0_7] : memref<1x128xf32, #tpu.memory_space<vmem>>, vector<1x128xf32>
    %c0_8 = arith.constant 0 : index
    %c0_9 = arith.constant 0 : index
    %23 = vector.load %arg3[%c0_8, %c0_9] : memref<1x128xf32, #tpu.memory_space<vmem>>, vector<1x128xf32>
    %24 = vector.broadcast %22 : vector<1x128xf32> to vector<16x128xf32>
    %25 = arith.mulf %21, %24 : vector<16x128xf32>
    %26 = vector.broadcast %23 : vector<1x128xf32> to vector<16x128xf32>
    %27 = arith.addf %25, %26 : vector<16x128xf32>
    %c0_10 = arith.constant 0 : index
    %c0_11 = arith.constant 0 : index
    %28 = vector.load %arg4[%c0_10, %c0_11] : memref<16x128xf32, #tpu.memory_space<vmem>>, vector<16x128xf32>
    tpu.vector_store %arg4[%c0_10, %c0_11], %27 {strides = array<i32>} : memref<16x128xf32, #tpu.memory_space<vmem>>, vector<16x128xf32>,
    return
  }
  func.func @transform_0(%arg0: i32) -> (i32, i32) {
    %c0_i32 = arith.constant 0 : i32
    %c0_i32_0 = arith.constant 0 : i32
    return %arg0, %c0_i32 : i32, i32
  }
  func.func @transform_1(%arg0: i32) -> (i32, i32) {
    %c0_i32 = arith.constant 0 : i32
    %c0_i32_0 = arith.constant 0 : i32
    %c0_i32_1 = arith.constant 0 : i32
    return %c0_i32, %c0_i32_0 : i32, i32
  }
  func.func @transform_2(%arg0: i32) -> (i32, i32) {
    %c0_i32 = arith.constant 0 : i32
    %c0_i32_0 = arith.constant 0 : i32
    %c0_i32_1 = arith.constant 0 : i32
    return %c0_i32, %c0_i32_0 : i32, i32
  }
  func.func @transform_3(%arg0: i32) -> (i32, i32) {
    %c0_i32 = arith.constant 0 : i32
    %c0_i32_0 = arith.constant 0 : i32
    return %arg0, %c0_i32 : i32, i32
  }
}

</mosaic_0001>

<bundles_post_ra>
// kernel: tpu_custom_call.1
= control target key start
LH: loop header
LB: loop body
LE: loop exit
PB: predicated region body
PF: predicated region fallthrough
CT: control target
= control target key end

     0   :  { %8 = vsyncpa [#allocation3], 0  ;;  %s714_s0 = inlined_call_operand.hbm [shape: f32[32,128], index: 0, kind: input, shape index: {}]   ;;  %s715_s1 = inlined_call_operand.vmem [shape: f32[1,128], index: 1, kind: input, shape index: {}]   ;;  %s716_s2 = inlined_call_operand.vmem [shape: f32[1,128], index: 2, kind: input, shape index: {}]   ;;  %s717_s3 = inlined_call_operand.hbm [shape: f32[32,128], index: 3, kind: output, shape index: {}]  }
   0x1   :  { %10 = vsyncpa [#allocation3 + $0x1], 0 }
   0x2   :  { %11 = vsyncpa [#allocation4], 0 }
   0x3   :  { %13 = vsyncpa [#allocation4 + $0x1], 0  ;;  %s542_s12 = smov 0   ;;  %s544_s13 = smov 0  }
   0x4   :  { %s546_s14 = smov 0   ;;  %s548_s15 = smov 0  }
   0x5 LB: > { %s563_s16 = sadd.s32 4294967295, %s514_s15   ;;  %s342_s17 = sadd.s32 4294967294, %s514_s15   ;;  %s514_s15 = sphi %s548_s15, %s730_s15   ;;  %s510_s14 = sphi %s546_s14, %s729_s14   ;;  %s506_s13 = sphi %s544_s13, %s728_s13   ;;  %s502_s12 = sphi %s542_s12, %s727_s12  }
   0x6   : > { %s567_s18 = sadd.s32 1, %s514_s15   ;;  %s26_s19 = sadd.s32 1, %s510_s14 }
   0x7   : > { %s23_s20 = ssub.s32 %s514_s15, %s567_s18  ;;  %p33_p0 = scmp.ne.s32.totalorder %s510_s14, %s506_s13 }
   0x8   : > { %p24_p1 = scmp.eq.s32.totalorder %s23_s20, 0  ;;  %p34_p2 = scmp.eq.s32.totalorder %s514_s15, 0 }
   0x9   : > { %p39_p3 = scmp.ne.s32.totalorder %s506_s13, %s502_s12  ;;  %p40_p4 = scmp.eq.s32.totalorder %s563_s16, 0 }
   0xa   : > { %s579_s21 = scalar_select %p24_p1, %s510_s14, %s26_s19  }
   0xb   : > { %p581_p5 = por %p34_p2, %p33_p0  ;;  %p585_p6 = por %p40_p4, %p39_p3 }
   0xc   : > { %p105_p7 = scmp.eq.s32.totalorder %s563_s16, 1  ;;  %p111_p8 = scmp.eq.s32.totalorder %s342_s17, 1 }
   0xd   : > { %p372_p10 = scmp.lt.s32.totalorder %s514_s15, 2  ;;  %s137_s26 = sand.u32 1, %s510_s14  }
   0xe   : > { %p592_p11 = por %p105_p7, %p33_p0  ;;  %p596_p12 = por %p111_p8, %p39_p3 }
   0xf   : > { %s358_s27 = sshll.u32 %s514_s15, 8  ;;  %s345_s28 = sshll.u32 %s137_s26, 4 }
  0x10   : > { %s721_s24 = scalar_select %p592_p11, 1, 0 }
  0x11   : > { %s722_s25 = scalar_select %p596_p12, 1, 0 }
  0x12   : > { %s605_s4 = scalar_lea.hbm %s714_s0, %s358_s27  ;;  %s141_s5 = scalar_lea.vmem [#allocation2], %s345_s28 }
  0x13   : > { %s148_s6 = sshll.u32 %s141_s5, 4  ;;  %p609_p13 = pnand %p372_p10, %p581_p5  ;;  %s613_s6 = int_to_ptr.vmem [resolvable:$true] %s148_s6 }
  0x14   : > { %s615_s8 = scalar_lea.sflag [#allocation3], %s137_s26  ;;  %s418_s9 = scalar_lea.hbm %s605_s4, 256 }
  0x15   : > { %p419_p0 = scmp.ne.s32.totalorder %s605_s4, %s418_s9  ;;  %p420_p1 = pneg %p609_p13 }
  0x16   : > { %s423_s17 = scalar_lea.hbm %s714_s0, 512  ;;  %p424_p4 = scmp.lt.u32.totalorder %s605_s4, %s714_s0 }
  0x17   : > { %p421_p2 = pnand %p420_p1, %p419_p0  ;;  %p425_p5 = scmp.lt.u32.totalorder %s423_s17, %s418_s9 }
  0x18   : > { %p427_p8 = scmp.lt.u32.totalorder %s418_s9, %s605_s4 }
  0x19   : > { %p422_p3 = pneg %p421_p2  ;;  %p426_p7 = por %p425_p5, %p424_p4 }
  0x1b   : > { %p428_p10 = por %p427_p8, %p426_p7 }
  0x1d   : > { %p429_p9 = pnand %p428_p10, %p422_p3 }
  0x1f   : > { %432 = shalt.err (!%p429_p9)
}
  0x20   : > { %s433_s22 = scalar_lea.vmem %s613_s6, 256  ;;  %s516_s26 = smov [#allocation2]  }
  0x21   : > { %p434_p0 = scmp.ne.s32.totalorder %s613_s6, %s433_s22  ;;  %s438_s27 = sshll.u32 %s516_s26, 4  ;;  %s439_s27 = int_to_ptr.vmem [resolvable:$false] %s438_s27 }
  0x22   : > { %s440_s28 = scalar_lea.vmem %s439_s27, 512  ;;  %p441_p11 = scmp.lt.s32.totalorder %s613_s6, %s439_s27 }
  0x23   : > { %p436_p2 = pnand %p434_p0, %p420_p1  ;;  %p442_p4 = scmp.lt.s32.totalorder %s440_s28, %s433_s22 }
  0x25   : > { %p437_p12 = pneg %p436_p2  ;;  %p443_p5 = por %p442_p4, %p441_p11 }
  0x27   : > { %p444_p7 = pnand %p443_p5, %p437_p12 }
  0x29   : > { %447 = shalt.err (!%p444_p7)
}
  0x2a   : > { %s517_s29 = smov 128   ;;  %s518_s30 = smov 8  }
  0x2b   : > { %367 = dma.hbm_to_vmem [thread:$0]  (!%p609_p13), %s605_s4, 256, %s613_s6, %s615_s8, %s517_s29, %s517_s29, %s518_s30  }
  0x2c   : > { %p348_p9 = scmp.ge.s32.totalorder %s514_s15, 1  ;;  %p156_p1 = scmp.lt.s32.totalorder %s514_s15, 3 }
  0x2e   : > { %p157_p3 = pnand %p348_p9, %p156_p1 }
  0x2f   : > { %s646_s5 = sand.u32 (!%p157_p3), 1, %s506_s13  }
  0x30   : > { %160 = sbr.rel (%p157_p3) target bundleno = 262 (0x106), region = 32  ;;  %s349_s9 = sshll.u32 (!%p157_p3), %s646_s5, 4 }
  0x31   : > { %s163_s10 = scalar_lea.sflag (!%p157_p3), [#allocation3], %s646_s5  ;;  %s166_s11 = scalar_lea.vmem (!%p157_p3), [#allocation2], %s349_s9 }
  0x37   : > { %493 = dma.done.wait (%p585_p6), %s163_s10, 256  }
  0x38   : > { %495 = vsyncadd (%p585_p6), %s163_s10, 4294967040  ;;  %v191_v0 = vld [vmem:[%s166_s11] sm:$0xff]  ;;  %v192_v2 = vld [vmem:[%s166_s11 + $0x8] sm:$0xff]  ;;  %s359_s8 = sshll.u32 %s563_s16, 8  ;;  %s188_s17 = scalar_lea.vmem [#allocation5], %s349_s9 }
  0x39   : > { %193 = vadd.xlane.f32.xlu0 %v191_v0  ;;  %v197_v1 = vmul.f32 %v191_v0, %v191_v0  ;;  %v198_v3 = vmul.f32 %v192_v2, %v192_v2  ;;  %v351_v32 = vld [vmem:[%s715_s1] ss:$0 sm:$0xff]  ;;  %s269_s19 = sshll.u32 %s188_s17, 4  ;;  %s668_s26 = scalar_lea.hbm %s717_s3, %s359_s8  ;;  %s670_s19 = int_to_ptr.vmem [resolvable:$true] %s269_s19 }
  0x3a   : > { %v352_v34 = vld [vmem:[%s716_s2] ss:$0 sm:$0xff]  ;;  %s256_s27 = scalar_lea.sflag [#allocation4], %s646_s5  ;;  %s448_s28 = scalar_lea.vmem %s670_s19, 256 }
  0x3b   : > { %199 = vadd.xlane.f32.xlu1 %v197_v1  ;;  %p449_p6 = scmp.ne.s32.totalorder %s670_s19, %s448_s28  ;;  %p724_p11 = scmp.ne.s32.totalorder %s721_s24, 0 }
  0x3c   : > { %s519_s16 = smov [#allocation5]  }
  0x3d   : > { %195 = vadd.xlane.f32.xlu0 %v192_v2  ;;  %p450_p12 = pnand %p449_p6, %p724_p11  ;;  %s452_s29 = sshll.u32 %s519_s16, 4  ;;  %s453_s29 = int_to_ptr.vmem [resolvable:$false] %s452_s29 }
  0x3e   : > { %s454_s30 = scalar_lea.vmem %s453_s29, 512  ;;  %p455_p8 = scmp.lt.s32.totalorder %s670_s19, %s453_s29 }
  0x3f   : > { %201 = vadd.xlane.f32.xlu1 %v198_v3  ;;  %p451_p13 = pneg %p450_p12  ;;  %p456_p10 = scmp.lt.s32.totalorder %s454_s30, %s448_s28 }
  0x41   : > { %p457_p0 = por %p456_p10, %p455_p8 }
  0x43   : > { %p458_p2 = pnand %p457_p0, %p451_p13 }
  0xc6   : > { %v194_v4 = vpop.xlane.xlu0 %193 }
  0xc7   : > { %v203_v5 = vmul.f32 0.0078125, %v194_v4 }
  0xc8   : > { %v200_v6 = vpop.xlane.xlu1 %199 }
  0xc9   : > { %v205_v7 = vmul.f32 %v203_v5, %v194_v4  ;;  %v231_v30 = vsub.f32 %v191_v0, %v203_v5 }
  0xca   : > { %v196_v8 = vpop.xlane.xlu0 %195 }
  0xcb   : > { %v204_v9 = vmul.f32 0.0078125, %v196_v8  ;;  %v207_v10 = vsub.f32 %v200_v6, %v205_v7 }
  0xcc   : > { %v202_v11 = vpop.xlane.xlu1 %201 }
  0xcd   : > { %v206_v12 = vmul.f32 %v204_v9, %v196_v8  ;;  %v209_v13 = vmul.f32 0.007874016, %v207_v10  ;;  %v232_v36 = vsub.f32 %v192_v2, %v204_v9 }
  0xcf   : > { %v211_v14 = vmax.f32 %v209_v13, 0.0  ;;  %v208_v15 = vsub.f32 %v202_v11, %v206_v12 }
  0xd1   : > { %410 = vrsqrt.f32 %v211_v14  ;;  %v210_v16 = vmul.f32 0.007874016, %v208_v15  ;;  %vm215_vm0 = vcmp.eq.f32.partialorder %v211_v14, inf  ;;  %v218_v20 = vand.u32 2147483648, %v211_v14 }
  0xd2   : > { %vm217_vm1 = vcmp.eq.f32.partialorder %v211_v14, 0.0 }
  0xd3   : > { %v212_v17 = vmax.f32 %v210_v16, 0.0 }
  0xd5   : > { %412 = vrsqrt.f32 %v212_v17  ;;  %vm222_vm2 = vcmp.eq.f32.partialorder %v212_v17, inf  ;;  %v225_v26 = vand.u32 2147483648, %v212_v17  ;;  %vm224_vm3 = vcmp.eq.f32.partialorder %v212_v17, 0.0 }
  0xdb   : > { %v411_v18 = vpop.eup %410 }
  0xdc   : > { %v214_v19 = vmul.f32 %v411_v18, %v211_v14 }
  0xde   : > { %v216_v21 = vsel %vm215_vm0, %v211_v14, %v214_v19 }
  0xdf   : > { %v219_v22 = vsel %vm217_vm1, %v218_v20, %v216_v21  ;;  %v413_v23 = vpop.eup %412 }
  0xe0   : > { %v227_v24 = vadd.f32 1e-05, %v219_v22  ;;  %v221_v25 = vmul.f32 %v413_v23, %v212_v17 }
  0xe2   : > { %414 = vrcp.f32 %v227_v24  ;;  %v223_v27 = vsel %vm222_vm2, %v212_v17, %v221_v25 }
  0xe3   : > { %v226_v28 = vsel %vm224_vm3, %v225_v26, %v223_v27 }
  0xe4   : > { %v228_v29 = vadd.f32 1e-05, %v226_v28 }
  0xe6   : > { %416 = vrcp.f32 %v228_v29 }
  0xec   : > { %v415_v31 = vpop.eup %414 }
  0xed   : > { %v233_v33 = vmul.f32 %v415_v31, %v231_v30 }
  0xef   : > { %v243_v35 = vmul.f32 %v351_v32, %v233_v33 }
  0xf0   : > { %v417_v37 = vpop.eup %416 }
  0xf1   : > { %v251_v38 = vadd.f32 %v352_v34, %v243_v35  ;;  %v234_v39 = vmul.f32 %v417_v37, %v232_v36 }
  0xf3   : > { %253 = vst [vmem:[%s188_s17] sm:$0xff] %v251_v38  ;;  %v244_v40 = vmul.f32 %v351_v32, %v234_v39 }
  0xf5   : > { %v252_v41 = vadd.f32 %v352_v34, %v244_v40 }
  0xf7   : > { %254 = vst [vmem:[%s188_s17 + $0x8] sm:$0xff] %v252_v41 }
  0xf8   : > { %461 = shalt.err (!%p458_p2)
}
  0xf9   : > { %s462_s9 = scalar_lea.hbm %s668_s26, 256  ;;  %s466_s23 = scalar_lea.hbm %s717_s3, 512 }
  0xfa   : > { %p463_p4 = scmp.ne.s32.totalorder %s668_s26, %s462_s9  ;;  %p467_p9 = scmp.lt.u32.totalorder %s668_s26, %s717_s3 }
  0xfb   : > { %p468_p1 = scmp.lt.u32.totalorder %s466_s23, %s462_s9  ;;  %p470_p6 = scmp.lt.u32.totalorder %s462_s9, %s668_s26 }
  0xfc   : > { %p464_p5 = pnand %p463_p4, %p724_p11 }
  0xfd   : > { %p469_p3 = por %p468_p1, %p467_p9 }
  0xfe   : > { %p465_p7 = pneg %p464_p5 }
  0xff   : > { %p471_p12 = por %p470_p6, %p469_p3 }
 0x101   : > { %p472_p13 = pnand %p471_p12, %p465_p7 }
 0x103   : > { %475 = shalt.err (!%p472_p13)
}
 0x104   : > { %s520_s7 = smov 128   ;;  %s521_s8 = smov 8  }
 0x105   : > { %362 = dma.vmem_to_hbm [thread:$0]  (%p724_p11), %s670_s19, 256, %s668_s26, %s256_s27, %s520_s7, %s520_s7, %s521_s8  }
 0x106 PF: > { %s284_s17 = sand.u32 1, %s502_s12   ;;  %p725_p8 = scmp.ne.s32.totalorder %s722_s25, 0 }
 0x107   : > { %p726_p10 = scmp.ge.s32.totalorder %s514_s15, 2  ;;  %s285_s20 = scalar_lea.sflag [#allocation4], %s284_s17 }
 0x109   : > { %p369_p0 = pnand %p726_p10, %p725_p8 }
 0x10b   : > { %497 = dma.done.wait (!%p369_p0), %s285_s20, 256  }
 0x10c   : > { %499 = vsyncadd (!%p369_p0), %s285_s20, 4294967040  ;;  %p16_p2 = scmp.ge.s32.totalorder %s567_s18, 4   ;;  %s727_s12 = smov %s506_s13 }
 0x10d   : > { %s728_s13 = smov %s510_s14  ;;  %s729_s14 = smov %s579_s21 }
 0x10e   : > { %s730_s15 = smov %s567_s18  ;;  %18 = sbr.rel (!%p16_p2) target bundleno = 5 (0x5), region = 77 }
 0x115   :  { %290 = vsyncpa [#allocation3], 1 }
 0x116   :  { %292 = vsyncpa [#allocation3 + $0x1], 1 }
 0x117   :  { %293 = vsyncpa [#allocation4], 1 }
 0x118   :  { %295 = vsyncpa [#allocation4 + $0x1], 1 }

</bundles_post_ra>
